<compile_context>
chip_gen: v7x
topology: tpu7x:2x2x1
jax: 0.10.0
libtpu: 0.0.40
codegen_flags: <defaults>
</compile_context>

<pallas_src>
import functools

import jax
import jax.numpy as jnp
from jax.experimental import pallas as pl
from jax.experimental.pallas import tpu as pltpu


# Double-buffered-input budget (native-dtype bytes).  Conservative enough to fit
# v5e's scoped VMEM even before raising the limit; the limit is raised anyway.
_DEFAULT_INPUT_VMEM_BUDGET = 10 * 1024 * 1024
_VMEM_LIMIT_BYTES = 32 * 1024 * 1024   # explicit scoped-VMEM limit (safe on v5e/v6e/v7x)


# ----------------------------------------------------------------------------
# linear MMD:  loss = || mean(source, 0) - mean(target, 0) ||^2
# ----------------------------------------------------------------------------
def _linear_mmd_kernel(src_ref, tgt_ref, out_ref, *, n_src, n_tgt):
    k = pl.program_id(0)

    @pl.when(k == 0)
    def _init():
        out_ref[...] = jnp.zeros_like(out_ref)

    s = src_ref[...].astype(jnp.float32)                      # (n, td)
    t = tgt_ref[...].astype(jnp.float32)                      # (m, td)
    delta = (jnp.sum(s, axis=0, keepdims=True) * (1.0 / n_src) -
             jnp.sum(t, axis=0, keepdims=True) * (1.0 / n_tgt))   # (1, td)
    # Output block index is constant across the grid -> stays VMEM-resident.
    out_ref[...] += jnp.sum(delta * delta, axis=-1, keepdims=True)  # (1, 1)


# ----------------------------------------------------------------------------
# rbf MMD: multi-bandwidth Gaussian kernel MMD with data-dependent bandwidth
# ----------------------------------------------------------------------------
def _sum11(x):
    """Full reduction to a (1, 1) block (lane reduce then sublane reduce)."""
    return jnp.sum(jnp.sum(x, axis=-1, keepdims=True), axis=0, keepdims=True)


def _diag_parts(gram, n):
    """Return (diag as (n,1), diag as (1,n)) of a square (n,n) Gram block."""
    rows = jax.lax.broadcasted_iota(jnp.int32, (n, n), 0)
    cols = jax.lax.broadcasted_iota(jnp.int32, (n, n), 1)
    masked = jnp.where(rows == cols, gram, 0.0)
    return (jnp.sum(masked, axis=-1, keepdims=True),   # (n, 1)
            jnp.sum(masked, axis=0, keepdims=True))    # (1, n)


def _rbf_mmd_kernel(src_ref, tgt_ref, out_ref, ss_ref, st_ref, tt_ref, *,
                    n_src, n_tgt, kernel_mul, kernel_num, fix_sigma):
    k = pl.program_id(0)
    nt = n_src + n_tgt
    hi = jax.lax.Precision.HIGHEST

    @pl.when(k == 0)
    def _init():
        ss_ref[...] = jnp.zeros_like(ss_ref)
        st_ref[...] = jnp.zeros_like(st_ref)
        tt_ref[...] = jnp.zeros_like(tt_ref)

    s = src_ref[...].astype(jnp.float32)                      # (n, td)
    t = tgt_ref[...].astype(jnp.float32)                      # (m, td)
    dn = (((1,), (1,)), ((), ()))                             # contract feature tile
    ss_ref[...] += jax.lax.dot_general(s, s, dn, precision=hi,
                                       preferred_element_type=jnp.float32)  # (n,n)
    st_ref[...] += jax.lax.dot_general(s, t, dn, precision=hi,
                                       preferred_element_type=jnp.float32)  # (n,m)
    tt_ref[...] += jax.lax.dot_general(t, t, dn, precision=hi,
                                       preferred_element_type=jnp.float32)  # (m,m)

    @pl.when(k == pl.num_programs(0) - 1)
    def _fin():
        gram_ss = ss_ref[...]
        gram_st = st_ref[...]
        gram_tt = tt_ref[...]

        # Row squared norms from the Gram diagonals (epilogue-only XLU work).
        sq_s_col, sq_s_row = _diag_parts(gram_ss, n_src)      # (n,1), (1,n)
        sq_t_col, sq_t_row = _diag_parts(gram_tt, n_tgt)      # (m,1), (1,m)

        # ||xi - xj||^2 = ||xi||^2 + ||xj||^2 - 2 <xi, xj>, clamped at 0.
        l2_ss = jnp.maximum(sq_s_col + sq_s_row - 2.0 * gram_ss, 0.0)   # (n,n)
        l2_tt = jnp.maximum(sq_t_col + sq_t_row - 2.0 * gram_tt, 0.0)   # (m,m)
        l2_st = jnp.maximum(sq_s_col + sq_t_row - 2.0 * gram_st, 0.0)   # (n,m)

        if fix_sigma:   # truthiness, matching the PyTorch module
            bw = jnp.full((1, 1), float(fix_sigma), jnp.float32)
        else:
            total_l2 = _sum11(l2_ss) + _sum11(l2_tt) + 2.0 * _sum11(l2_st)
            bw = total_l2 / float(nt * nt - nt)                # (1,1)
        bw = bw / (kernel_mul ** (kernel_num // 2))

        inv_n2 = 1.0 / float(n_src * n_src)
        inv_m2 = 1.0 / float(n_tgt * n_tgt)
        inv_nm = 1.0 / float(n_src * n_tgt)

        loss = jnp.zeros((1, 1), jnp.float32)
        for i in range(kernel_num):                            # static, small (5)
            inv_bw = 1.0 / (bw * (kernel_mul ** i))            # (1,1)
            loss += inv_n2 * _sum11(jnp.exp(-l2_ss * inv_bw))          # mean K_xx
            loss += inv_m2 * _sum11(jnp.exp(-l2_tt * inv_bw))          # mean K_yy
            loss -= 2.0 * inv_nm * _sum11(jnp.exp(-l2_st * inv_bw))    # -mean K_xy - mean K_yx
        out_ref[...] = loss


# ----------------------------------------------------------------------------
# Wrappers
# ----------------------------------------------------------------------------
def _feature_tile(d, rows_total, dtype_bytes, budget_bytes):
    """Pick the feature tile width and grid length under a VMEM input budget.

    Single full-dim block (no padding, no step overhead) whenever the
    double-buffered inputs fit; otherwise the largest 128-multiple tile.
    """
    if 2 * rows_total * d * dtype_bytes <= budget_bytes:
        return d, 1
    td = (budget_bytes // (2 * rows_total * dtype_bytes)) // 128 * 128
    td = max(int(td), 128)
    grid = -(-d // td)
    return td, grid


def _maybe_pad_features(x, d_padded):
    d = x.shape[1]
    if d == d_padded:
        return x
    # Zero padding is exact: padded lanes contribute 0 to means, Gram and L2.
    return jnp.pad(x, ((0, 0), (0, d_padded - d)))


def _linear_mmd(source, target, max_input_vmem_bytes):
    n, d = source.shape
    m, d2 = target.shape
    assert d == d2, "source/target feature dims must match"
    dtype_bytes = jnp.dtype(source.dtype).itemsize
    td, grid = _feature_tile(d, n + m, dtype_bytes, max_input_vmem_bytes)
    dp = td * grid
    src = _maybe_pad_features(source, dp)
    tgt = _maybe_pad_features(target, dp)

    kernel = functools.partial(_linear_mmd_kernel, n_src=n, n_tgt=m)
    cost = pl.CostEstimate(flops=3 * (n + m) * d,
                           transcendentals=0,
                           bytes_accessed=(n + m) * d * dtype_bytes + 4)
    out = pl.pallas_call(
        kernel,
        grid=(grid,),
        in_specs=[pl.BlockSpec((n, td), lambda k: (0, k)),
                  pl.BlockSpec((m, td), lambda k: (0, k))],
        out_specs=pl.BlockSpec((1, 1), lambda k: (0, 0)),
        out_shape=jax.ShapeDtypeStruct((1, 1), jnp.float32),
        compiler_params=pltpu.CompilerParams(
            dimension_semantics=("arbitrary",),
            vmem_limit_bytes=_VMEM_LIMIT_BYTES),
        cost_estimate=cost,
    )(src, tgt)
    return out[0, 0]


def _rbf_mmd(source, target, kernel_mul, kernel_num, fix_sigma,
             max_input_vmem_bytes):
    n, d = source.shape
    m, d2 = target.shape
    assert d == d2, "source/target feature dims must match"
    nt = n + m
    dtype_bytes = jnp.dtype(source.dtype).itemsize
    td, grid = _feature_tile(d, nt, dtype_bytes, max_input_vmem_bytes)
    dp = td * grid
    src = _maybe_pad_features(source, dp)
    tgt = _maybe_pad_features(target, dp)

    kernel = functools.partial(
        _rbf_mmd_kernel, n_src=n, n_tgt=m,
        kernel_mul=float(kernel_mul), kernel_num=int(kernel_num),
        fix_sigma=None if fix_sigma is None else float(fix_sigma))
    cost = pl.CostEstimate(
        flops=2 * nt * nt * d + 6 * kernel_num * nt * nt,
        transcendentals=kernel_num * (n * n + m * m + n * m),
        bytes_accessed=nt * d * dtype_bytes + 4)
    out = pl.pallas_call(
        kernel,
        grid=(grid,),
        in_specs=[pl.BlockSpec((n, td), lambda k: (0, k)),
                  pl.BlockSpec((m, td), lambda k: (0, k))],
        out_specs=pl.BlockSpec((1, 1), lambda k: (0, 0)),
        out_shape=jax.ShapeDtypeStruct((1, 1), jnp.float32),
        scratch_shapes=[pltpu.VMEM((n, n), jnp.float32),   # S.S^T accumulator
                        pltpu.VMEM((n, m), jnp.float32),   # S.T^T accumulator
                        pltpu.VMEM((m, m), jnp.float32)],  # T.T^T accumulator
        compiler_params=pltpu.CompilerParams(
            dimension_semantics=("arbitrary",),
            vmem_limit_bytes=_VMEM_LIMIT_BYTES),
        cost_estimate=cost,
    )(src, tgt)
    return out[0, 0]


@functools.partial(jax.jit, static_argnames=(
    "kernel_type", "kernel_mul", "kernel_num", "fix_sigma",
    "max_input_vmem_bytes"))
def mmd_loss(source, target, kernel_type="linear", kernel_mul=2.0,
             kernel_num=5, fix_sigma=None,
             max_input_vmem_bytes=_DEFAULT_INPUT_VMEM_BUDGET):
    """MMDLoss.forward.  source: (n, D), target: (m, D) -> scalar loss."""
    if kernel_type == "linear":
        return _linear_mmd(source, target, max_input_vmem_bytes)
    if kernel_type == "rbf":
        # NB: the PyTorch module forces fix_sigma=None in __init__; supported
        # here for completeness with the module's truthiness semantics.
        return _rbf_mmd(source, target, kernel_mul, kernel_num, fix_sigma,
                        max_input_vmem_bytes)
    raise ValueError(f"unknown kernel_type: {kernel_type}")


# ----------------------------------------------------------------------------
# Pure-JAX references (mirror the PyTorch module) for validation
# ----------------------------------------------------------------------------
def _ref_linear(source, target):
    delta = (source.astype(jnp.float32).mean(0) -
             target.astype(jnp.float32).mean(0))
    return jnp.dot(delta, delta)


def _ref_rbf(source, target, kernel_mul=2.0, kernel_num=5, fix_sigma=None):
    n = source.shape[0]
    total = jnp.concatenate([source, target], axis=0).astype(jnp.float32)
    ns = total.shape[0]
    diff = total[None, :, :] - total[:, None, :]
    l2 = jnp.sum(diff * diff, axis=-1)
    bw = fix_sigma if fix_sigma else jnp.sum(l2) / (ns * ns - ns)
    bw = bw / (kernel_mul ** (kernel_num // 2))
    kmat = sum(jnp.exp(-l2 / (bw * kernel_mul ** i)) for i in range(kernel_num))
    xx = jnp.mean(kmat[:n, :n]); yy = jnp.mean(kmat[n:, n:])
    xy = jnp.mean(kmat[:n, n:]); yx = jnp.mean(kmat[n:, :n])
    return xx + yy - xy - yx


if __name__ == "__main__":
    n, m, d = 16, 16, 700   # D not a multiple of 128 -> exercises full-dim block path
    key = jax.random.PRNGKey(0)
    ks, kt = jax.random.split(key)
    source = jax.random.normal(ks, (n, d), jnp.float32)
    target = jax.random.normal(kt, (m, d), jnp.float32) + 0.5   # shifted domain

    ref_lin = _ref_linear(source, target)
    ref_rbf = _ref_rbf(source, target)

    # Fast path: single full-dim block (grid=(1,)), no padding.
    lin = mmd_loss(source, target, kernel_type="linear")
    rbf = mmd_loss(source, target, kernel_type="rbf",
                   kernel_mul=2.0, kernel_num=5, fix_sigma=None)
    # Tiled path: force a tiny VMEM budget to exercise the multi-step reduction
    # (td=256, zero-padded to 768, grid=(3,)) with the same semantics.
    lin_t = mmd_loss(source, target, kernel_type="linear",
                     max_input_vmem_bytes=64 * 1024)
    rbf_t = mmd_loss(source, target, kernel_type="rbf",
                     kernel_mul=2.0, kernel_num=5, fix_sigma=None,
                     max_input_vmem_bytes=64 * 1024)
    jax.block_until_ready((lin, rbf, lin_t, rbf_t))

    for name, got, ref in (("linear", lin, ref_lin), ("rbf", rbf, ref_rbf),
                           ("linear_tiled", lin_t, ref_lin),
                           ("rbf_tiled", rbf_t, ref_rbf)):
        assert got.shape == (), (name, got.shape)
        assert bool(jnp.isfinite(got)), (name, got)
        assert bool(jnp.allclose(got, ref, rtol=2e-2, atol=1e-2)), (name, got, ref)
    print("KERNEL_OK")
</pallas_src>

<mosaic_0001>
module attributes {stable_mosaic.version = 11 : i64} {
  func.func @_linear_mmd_kernel(%arg0: i32, %arg1: memref<16x700xf32, #tpu.memory_space<vmem>>, %arg2: memref<16x700xf32, #tpu.memory_space<vmem>>, %arg3: memref<1x1xf32, #tpu.memory_space<vmem>>) attributes {dimension_semantics = [#tpu.dimension_semantics<arbitrary>], iteration_bounds = array<i64: 1>, scalar_prefetch = 0 : i64, scratch_operands = 0 : i64, tpu.core_type = #tpu.core_type<tc>, window_params = [{transform_indices = @transform_0, window_bounds = array<i64: 16, 700>}, {transform_indices = @transform_1, window_bounds = array<i64: 16, 700>}, {pipeline_mode = #tpu.pipeline_mode<synchronous>, transform_indices = @transform_2, window_bounds = array<i64: 1, 1>}]} {
    %c0_i32 = arith.constant 0 : i32
    %0 = arith.cmpi eq, %arg0, %c0_i32 : i32
    %1 = arith.extui %0 : i1 to i32
    %c0_i32_0 = arith.constant 0 : i32
    %2 = arith.cmpi ne, %1, %c0_i32_0 : i32
    scf.if %2 {
      %cst_12 = arith.constant 0.000000e+00 : f32
      %20 = vector.broadcast %cst_12 : f32 to vector<1x1xf32>
      %c0_13 = arith.constant 0 : index
      %c0_14 = arith.constant 0 : index
      %21 = vector.load %arg3[%c0_13, %c0_14] : memref<1x1xf32, #tpu.memory_space<vmem>>, vector<1x1xf32>
      tpu.vector_store %arg3[%c0_13, %c0_14], %20 {strides = array<i32>} : memref<1x1xf32, #tpu.memory_space<vmem>>, vector<1x1xf32>,
    } else {
    }
    %c0 = arith.constant 0 : index
    %c0_1 = arith.constant 0 : index
    %3 = vector.load %arg1[%c0, %c0_1] : memref<16x700xf32, #tpu.memory_space<vmem>>, vector<16x700xf32>
    %c0_2 = arith.constant 0 : index
    %c0_3 = arith.constant 0 : index
    %4 = vector.load %arg2[%c0_2, %c0_3] : memref<16x700xf32, #tpu.memory_space<vmem>>, vector<16x700xf32>
    %cst = arith.constant dense<0.000000e+00> : vector<700xf32>
    %5 = vector.multi_reduction <add>, %3, %cst [0] : vector<16x700xf32> to vector<700xf32>
    %6 = vector.shape_cast %5 : vector<700xf32> to vector<1x700xf32>
    %cst_4 = arith.constant 6.250000e-02 : f32
    %7 = vector.broadcast %cst_4 : f32 to vector<1x700xf32>
    %8 = arith.mulf %6, %7 : vector<1x700xf32>
    %cst_5 = arith.constant dense<0.000000e+00> : vector<700xf32>
    %9 = vector.multi_reduction <add>, %4, %cst_5 [0] : vector<16x700xf32> to vector<700xf32>
    %10 = vector.shape_cast %9 : vector<700xf32> to vector<1x700xf32>
    %cst_6 = arith.constant 6.250000e-02 : f32
    %11 = vector.broadcast %cst_6 : f32 to vector<1x700xf32>
    %12 = arith.mulf %10, %11 : vector<1x700xf32>
    %13 = arith.subf %8, %12 : vector<1x700xf32>
    %c0_7 = arith.constant 0 : index
    %c0_8 = arith.constant 0 : index
    %14 = vector.load %arg3[%c0_7, %c0_8] : memref<1x1xf32, #tpu.memory_space<vmem>>, vector<1x1xf32>
    %15 = arith.mulf %13, %13 : vector<1x700xf32>
    %cst_9 = arith.constant dense<0.000000e+00> : vector<1xf32>
    %16 = vector.multi_reduction <add>, %15, %cst_9 [1] : vector<1x700xf32> to vector<1xf32>
    %17 = vector.shape_cast %16 : vector<1xf32> to vector<1x1xf32>
    %18 = arith.addf %14, %17 : vector<1x1xf32>
    %c0_10 = arith.constant 0 : index
    %c0_11 = arith.constant 0 : index
    %19 = vector.load %arg3[%c0_10, %c0_11] : memref<1x1xf32, #tpu.memory_space<vmem>>, vector<1x1xf32>
    tpu.vector_store %arg3[%c0_10, %c0_11], %18 {strides = array<i32>} : memref<1x1xf32, #tpu.memory_space<vmem>>, vector<1x1xf32>,
    return
  }
  func.func @transform_0(%arg0: i32) -> (i32, i32) {
    %c0_i32 = arith.constant 0 : i32
    %c0_i32_0 = arith.constant 0 : i32
    return %c0_i32, %arg0 : i32, i32
  }
  func.func @transform_1(%arg0: i32) -> (i32, i32) {
    %c0_i32 = arith.constant 0 : i32
    %c0_i32_0 = arith.constant 0 : i32
    return %c0_i32, %arg0 : i32, i32
  }
  func.func @transform_2(%arg0: i32) -> (i32, i32) {
    %c0_i32 = arith.constant 0 : i32
    %c0_i32_0 = arith.constant 0 : i32
    %c0_i32_1 = arith.constant 0 : i32
    return %c0_i32, %c0_i32_0 : i32, i32
  }
}

</mosaic_0001>

<bundles_post_ra>
// kernel: mmd_loss.1
= control target key start
LH: loop header
LB: loop body
LE: loop exit
PB: predicated region body
PF: predicated region fallthrough
CT: control target
= control target key end

     0   :  { %7 = vsyncpa [#allocation3], 0  ;;  %s353_s0 = inlined_call_operand.hbm [shape: f32[16,700], index: 0, kind: input, shape index: {}]   ;;  %s354_s1 = inlined_call_operand.hbm [shape: f32[16,700], index: 1, kind: input, shape index: {}]   ;;  %s355_s2 = inlined_call_operand.hbm [shape: f32[1,1], index: 2, kind: output, shape index: {}]  }
   0x1   :  { %8 = vsyncpa [#allocation6], 0 }
   0x2   :  { %9 = vsyncpa [#allocation4], 0  ;;  %s289_s9 = smov [#allocation2]   ;;  %s217_s13 = scalar_lea.hbm %s353_s0, 1536 }
   0x3   :  { %s15_s10 = sshll.u32 %s289_s9, 4  ;;  %p218_p0 = scmp.ne.s32.totalorder %s353_s0, %s217_s13  ;;  %s16_s10 = int_to_ptr.vmem [resolvable:$true] %s15_s10 }
   0x4   :  { %p221_p1 = scmp.lt.u32.totalorder %s217_s13, %s353_s0 }
   0x6   :  { %p223_p2 = pnand %p221_p1, %p218_p0 }
   0x8   :  { %226 = shalt.err (!%p223_p2)
}
   0x9   :  { %s227_s18 = scalar_lea.vmem %s16_s10, 1536  ;;  %p232_p4 = scmp.lt.s32.totalorder %s16_s10, %s16_s10 }
   0xa   :  { %p228_p3 = scmp.ne.s32.totalorder %s16_s10, %s227_s18  ;;  %p233_p5 = scmp.lt.s32.totalorder %s227_s18, %s227_s18 }
   0xc   :  { %p234_p6 = por %p233_p5, %p232_p4 }
   0xe   :  { %p235_p7 = pnand %p234_p6, %p228_p3 }
  0x10   :  { %238 = shalt.err (!%p235_p7)
}
  0x11   :  { %s290_s19 = smov 768   ;;  %s291_s20 = smov 48  }
  0x12   :  { %21 = dma.hbm_to_vmem [thread:$0]  %s353_s0, 1536, %s16_s10, [#allocation3], %s290_s19, %s290_s19, %s291_s20  }
  0x13   :  { %s292_s23 = smov [#allocation5]   ;;  %s239_s27 = scalar_lea.hbm %s354_s1, 1536 }
  0x14   :  { %s27_s24 = sshll.u32 %s292_s23, 4  ;;  %p240_p8 = scmp.ne.s32.totalorder %s354_s1, %s239_s27  ;;  %s28_s24 = int_to_ptr.vmem [resolvable:$true] %s27_s24 }
  0x15   :  { %p243_p9 = scmp.lt.u32.totalorder %s239_s27, %s354_s1 }
  0x17   :  { %p245_p10 = pnand %p243_p9, %p240_p8 }
  0x19   :  { %248 = shalt.err (!%p245_p10)
}
  0x1a   :  { %s249_s4 = scalar_lea.vmem %s28_s24, 1536  ;;  %p254_p12 = scmp.lt.s32.totalorder %s28_s24, %s28_s24 }
  0x1b   :  { %p250_p11 = scmp.ne.s32.totalorder %s28_s24, %s249_s4  ;;  %p255_p13 = scmp.lt.s32.totalorder %s249_s4, %s249_s4 }
  0x1d   :  { %p256_p0 = por %p255_p13, %p254_p12 }
  0x1f   :  { %p257_p1 = pnand %p256_p0, %p250_p11 }
  0x21   :  { %260 = shalt.err (!%p257_p1)
}
  0x22   :  { %33 = dma.hbm_to_vmem [thread:$0]  %s354_s1, 1536, %s28_s24, [#allocation6], %s290_s19, %s290_s19, %s291_s20  }
  0x23   :  { %283 = dma.done.wait [#allocation3], 1536  }
  0x24   :  { %284 = vsyncadd [#allocation3], 4294965760 }
  0x25   :  { %285 = dma.done.wait [#allocation6], 1536  }
  0x26   :  { %286 = vsyncadd [#allocation6], 4294965760  ;;  %vm44_vm0 = vcmask 0   ;;  %v293_v0 = vmov 0.0   ;;  %vm105_vm1 = vcmask 490496   ;;  %v46_v1 = vld [vmem:[#allocation2] sm:$0xff] }
  0x27   :  { %45 = vst.msk [vmem:[#allocation7] sm:$0x1] %vm44_vm0, %v293_v0  ;;  %v47_v2 = vld [vmem:[#allocation2 + $0x8] sm:$0xff]  ;;  %v48_v3 = vld [vmem:[#allocation2 + $0x10] sm:$0xff]  ;;  %v49_v4 = vld [vmem:[#allocation2 + $0x18] sm:$0xff]  ;;  %s294_s1 = smov [#allocation7]  }
  0x28   :  { %v50_v5 = vld [vmem:[#allocation2 + $0x20] sm:$0xff]  ;;  %v51_v6 = vld [vmem:[#allocation2 + $0x28] sm:$0xff]  ;;  %v52_v7 = vld [vmem:[#allocation2 + $0x30] sm:$0xff]  ;;  %s201_s6 = sshll.u32 %s294_s1, 4  ;;  %s202_s6 = int_to_ptr.vmem [resolvable:$true] %s201_s6 }
  0x29   :  { %v53_v8 = vld [vmem:[#allocation2 + $0x38] sm:$0xff]  ;;  %v54_v9 = vld [vmem:[#allocation2 + $0x40] sm:$0xff]  ;;  %v106_v10 = vsel %vm105_vm1, %v51_v6, 0.0  ;;  %v55_v11 = vld [vmem:[#allocation2 + $0x48] sm:$0xff]  ;;  %v70_v14 = vadd.f32 %v52_v7, %v46_v1  ;;  %s261_s7 = scalar_lea.vmem %s202_s6, 16  ;;  %s265_s8 = scalar_lea.vmem %s202_s6, 32 }
  0x2a   :  { %v56_v12 = vld [vmem:[#allocation2 + $0x50] sm:$0xff]  ;;  %v57_v13 = vld [vmem:[#allocation2 + $0x58] sm:$0xff]  ;;  %v77_v15 = vadd.f32 %v53_v8, %v47_v2  ;;  %v84_v16 = vadd.f32 %v54_v9, %v48_v3  ;;  %v91_v17 = vadd.f32 %v55_v11, %v49_v4  ;;  %v58_v20 = vld [vmem:[#allocation5] sm:$0xff]  ;;  %p262_p2 = scmp.ne.s32.totalorder %s202_s6, %s261_s7  ;;  %p266_p3 = scmp.lt.s32.totalorder %s202_s6, %s202_s6 }
  0x2b   :  { %v98_v18 = vadd.f32 %v56_v12, %v50_v5  ;;  %v107_v19 = vsel %vm105_vm1, %v57_v13, 0.0  ;;  %v59_v21 = vld [vmem:[#allocation5 + $0x8] sm:$0xff]  ;;  %v71_v22 = vrot.slane %v70_v14, 4  ;;  %v64_v26 = vld [vmem:[#allocation5 + $0x30] sm:$0xff]  ;;  %v65_v27 = vld [vmem:[#allocation5 + $0x38] sm:$0xff]  ;;  %p267_p4 = scmp.lt.s32.totalorder %s265_s8, %s261_s7 }
  0x2c   :  { %v78_v23 = vrot.slane %v77_v15, 4  ;;  %v85_v24 = vrot.slane %v84_v16, 4  ;;  %v108_v25 = vadd.f32 %v107_v19, %v106_v10  ;;  %v92_v28 = vrot.slane %v91_v17, 4  ;;  %v63_v52 = vld [vmem:[#allocation5 + $0x28] sm:$0xff]  ;;  %v60_v57 = vld [vmem:[#allocation5 + $0x10] sm:$0xff]  ;;  %v61_v58 = vld [vmem:[#allocation5 + $0x18] sm:$0xff] }
  0x2d   :  { %v99_v29 = vrot.slane %v98_v18, 4  ;;  %v72_v30 = vadd.f32 %v71_v22, %v70_v14  ;;  %v121_v36 = vadd.f32 %v64_v26, %v58_v20  ;;  %v128_v37 = vadd.f32 %v65_v27, %v59_v21  ;;  %v62_v59 = vld [vmem:[#allocation5 + $0x20] sm:$0xff]  ;;  %v67_v62 = vld [vmem:[#allocation5 + $0x48] sm:$0xff]  ;;  %v68_v63 = vld [vmem:[#allocation5 + $0x50] sm:$0xff]  ;;  %p268_p5 = por %p267_p4, %p266_p3 }
  0x2e   :  { %v79_v31 = vadd.f32 %v78_v23, %v77_v15  ;;  %v86_v32 = vadd.f32 %v85_v24, %v84_v16  ;;  %v109_v33 = vrot.slane %v108_v25, 4  ;;  %v93_v34 = vadd.f32 %v92_v28, %v91_v17  ;;  %v66_v61 = vld [vmem:[#allocation5 + $0x40] sm:$0xff]  ;;  %v69_v3 = vld [vmem:[#allocation5 + $0x58] sm:$0xff] }
  0x2f   :  { %v100_v35 = vadd.f32 %v99_v29, %v98_v18  ;;  %v73_v38 = vrot.slane %v72_v30, 2  ;;  %v122_v42 = vrot.slane %v121_v36, 4  ;;  %v129_v43 = vrot.slane %v128_v37, 4  ;;  %p269_p6 = pnand %p268_p5, %p262_p2 }
  0x30   :  { %v80_v39 = vrot.slane %v79_v31, 2  ;;  %v87_v40 = vrot.slane %v86_v32, 2  ;;  %v110_v41 = vadd.f32 %v109_v33, %v108_v25  ;;  %v94_v46 = vrot.slane %v93_v34, 2 }
  0x31   :  { %v74_v44 = vadd.f32 %v73_v38, %v72_v30  ;;  %v101_v47 = vrot.slane %v100_v35, 2  ;;  %v123_v48 = vadd.f32 %v122_v42, %v121_v36  ;;  %v130_v49 = vadd.f32 %v129_v43, %v128_v37 }
  0x32   :  { %v81_v45 = vadd.f32 %v80_v39, %v79_v31  ;;  %v88_v50 = vadd.f32 %v87_v40, %v86_v32  ;;  %v111_v51 = vrot.slane %v110_v41, 2  ;;  %v95_v60 = vadd.f32 %v94_v46, %v93_v34 }
  0x33   :  { %v75_v53 = vrot.slane %v74_v44, 1  ;;  %v124_v55 = vrot.slane %v123_v48, 2  ;;  %v131_v56 = vrot.slane %v130_v49, 2  ;;  %v102_v0 = vadd.f32 %v101_v47, %v100_v35 }
  0x34   :  { %v82_v54 = vrot.slane %v81_v45, 1  ;;  %v89_v4 = vrot.slane %v88_v50, 1  ;;  %v112_v5 = vadd.f32 %v111_v51, %v110_v41  ;;  %v156_v6 = vsel %vm105_vm1, %v63_v52, 0.0 }
  0x35   :  { %v125_v1 = vadd.f32 %v124_v55, %v123_v48  ;;  %v132_v2 = vadd.f32 %v131_v56, %v130_v49  ;;  %v76_v7 = vadd.f32 %v75_v53, %v74_v44  ;;  %v96_v11 = vrot.slane %v95_v60, 1 }
  0x36   :  { %v83_v8 = vadd.f32 %v82_v54, %v81_v45  ;;  %v135_v12 = vadd.f32 %v66_v61, %v60_v57  ;;  %v142_v13 = vadd.f32 %v67_v62, %v61_v58  ;;  %v149_v14 = vadd.f32 %v68_v63, %v62_v59 }
  0x37   :  { %v126_v9 = vrot.slane %v125_v1, 1  ;;  %v133_v10 = vrot.slane %v132_v2, 1  ;;  %v103_v15 = vrot.slane %v102_v0, 1  ;;  %v157_v18 = vsel %vm105_vm1, %v69_v3, 0.0 }
  0x38   :  { %v136_v19 = vrot.slane %v135_v12, 4  ;;  %v143_v20 = vrot.slane %v142_v13, 4  ;;  %v150_v21 = vrot.slane %v149_v14, 4  ;;  %v158_v22 = vadd.f32 %v157_v18, %v156_v6 }
  0x39   :  { %v127_v16 = vadd.f32 %v126_v9, %v125_v1  ;;  %v134_v17 = vadd.f32 %v133_v10, %v132_v2  ;;  %v115_v23 = vmul.f32 0.0625, %v76_v7  ;;  %v116_v24 = vmul.f32 0.0625, %v83_v8 }
  0x3a   :  { %v137_v27 = vadd.f32 %v136_v19, %v135_v12  ;;  %v144_v28 = vadd.f32 %v143_v20, %v142_v13  ;;  %v151_v29 = vadd.f32 %v150_v21, %v149_v14  ;;  %v159_v30 = vrot.slane %v158_v22, 4 }
  0x3b   :  { %v165_v25 = vmul.f32 0.0625, %v127_v16  ;;  %v166_v26 = vmul.f32 0.0625, %v134_v17  ;;  %v90_v31 = vadd.f32 %v89_v4, %v88_v50  ;;  %v113_v32 = vrot.slane %v112_v5, 1 }
  0x3c   :  { %v138_v33 = vrot.slane %v137_v27, 2  ;;  %v145_v34 = vrot.slane %v144_v28, 2  ;;  %v152_v35 = vrot.slane %v151_v29, 2  ;;  %v160_v36 = vadd.f32 %v159_v30, %v158_v22 }
  0x3d   :  { %v97_v37 = vadd.f32 %v96_v11, %v95_v60  ;;  %v104_v38 = vadd.f32 %v103_v15, %v102_v0  ;;  %v171_v39 = vsub.f32 %v115_v23, %v165_v25  ;;  %v172_v40 = vsub.f32 %v116_v24, %v166_v26  ;;  %v177_v15 = vld [vmem:[#allocation7] sm:$0x1] }
  0x3e   :  { %v139_v41 = vadd.f32 %v138_v33, %v137_v27  ;;  %v146_v42 = vadd.f32 %v145_v34, %v144_v28  ;;  %v153_v43 = vadd.f32 %v152_v35, %v151_v29  ;;  %v161_v44 = vrot.slane %v160_v36, 2 }
  0x3f   :  { %v114_v45 = vadd.f32 %v113_v32, %v112_v5  ;;  %v117_v46 = vmul.f32 0.0625, %v90_v31  ;;  %v118_v50 = vmul.f32 0.0625, %v97_v37  ;;  %v119_v52 = vmul.f32 0.0625, %v104_v38 }
  0x40   :  { %v140_v47 = vrot.slane %v139_v41, 1  ;;  %v147_v48 = vrot.slane %v146_v42, 1  ;;  %v154_v49 = vrot.slane %v153_v43, 1  ;;  %v162_v51 = vadd.f32 %v161_v44, %v160_v36 }
  0x41   :  { %v178_v53 = vmul.f32 %v171_v39, %v171_v39  ;;  %v179_v54 = vmul.f32 %v172_v40, %v172_v40  ;;  %v120_v59 = vmul.f32 0.0625, %v114_v45 }
  0x42   :  { %v141_v55 = vadd.f32 %v140_v47, %v139_v41  ;;  %v148_v56 = vadd.f32 %v147_v48, %v146_v42  ;;  %v155_v57 = vadd.f32 %v154_v49, %v153_v43  ;;  %v163_v58 = vrot.slane %v162_v51, 1 }
  0x43   :  { %v184_v0 = vadd.f32 %v179_v54, %v178_v53 }
  0x44   :  { %v164_v60 = vadd.f32 %v163_v58, %v162_v51  ;;  %v167_v61 = vmul.f32 0.0625, %v141_v55  ;;  %v168_v62 = vmul.f32 0.0625, %v148_v56  ;;  %v169_v63 = vmul.f32 0.0625, %v155_v57 }
  0x46   :  { %v170_v1 = vmul.f32 0.0625, %v164_v60  ;;  %v173_v2 = vsub.f32 %v117_v46, %v167_v61  ;;  %v174_v3 = vsub.f32 %v118_v50, %v168_v62  ;;  %v175_v4 = vsub.f32 %v119_v52, %v169_v63 }
  0x48   :  { %v176_v5 = vsub.f32 %v120_v59, %v170_v1  ;;  %v180_v6 = vmul.f32 %v173_v2, %v173_v2  ;;  %v181_v7 = vmul.f32 %v174_v3, %v174_v3  ;;  %v182_v8 = vmul.f32 %v175_v4, %v175_v4 }
  0x4a   :  { %v183_v9 = vmul.f32 %v176_v5, %v176_v5  ;;  %v185_v10 = vadd.f32 %v184_v0, %v180_v6 }
  0x4c   :  { %v186_v11 = vadd.f32 %v185_v10, %v181_v7  ;;  %v188_v12 = vsel %vm105_vm1, %v183_v9, 0.0 }
  0x4e   :  { %v187_v13 = vadd.f32 %v186_v11, %v182_v8 }
  0x50   :  { %v189_v14 = vadd.f32 %v188_v12, %v187_v13 }
  0x52   :  { %190 = vadd.xlane.f32.xlu0 %v189_v14 }
  0xdf   :  { %v191_v16 = vpop.xlane.xlu0 %190 }
  0xe0   :  { %v192_v17 = vadd.f32 %v191_v16, %v177_v15 }
  0xe2   :  { %194 = vst.msk [vmem:[#allocation7] sm:$0x1] %vm44_vm0, %v192_v17 }
  0xe3   :  { %272 = shalt.err (!%p269_p6)
}
  0xe4   :  { %s273_s11 = scalar_lea.hbm %s355_s2, 16 }
  0xe5   :  { %p274_p7 = scmp.ne.s32.totalorder %s355_s2, %s273_s11  ;;  %p277_p8 = scmp.lt.u32.totalorder %s273_s11, %s355_s2 }
  0xe7   :  { %p279_p9 = pnand %p277_p8, %p274_p7 }
  0xe9   :  { %282 = shalt.err (!%p279_p9)
}
  0xea   :  { %204 = dma.vmem_to_hbm [thread:$0]  %s202_s6, 16, %s355_s2, [#allocation4]  }
  0xeb   :  { %287 = dma.done.wait [#allocation4], 16  }
  0xec   :  { %288 = vsyncadd [#allocation4], 4294967280 }
  0xed   :  { %208 = vsyncpa [#allocation3], 1 }
  0xee   :  { %209 = vsyncpa [#allocation6], 1 }
  0xef   :  { %210 = vsyncpa [#allocation4], 1 }

</bundles_post_ra>
